<compile_context>
chip_gen: v7x
topology: tpu7x:2x2x1
jax: 0.10.0
libtpu: 0.0.40
codegen_flags: <defaults>
</compile_context>

<pallas_src>
import functools
import math

import jax
import jax.numpy as jnp
from jax import lax
from jax.experimental import pallas as pl
from jax.experimental.pallas import tpu as pltpu


def _head_kernel(x_ref, wqkv_ref, o_ref, *, scale, head_size):
    # x_ref:    (Bblk, T, C)   bf16  block of sequences
    # wqkv_ref: (C, 3*Hs)      bf16  fused [Wk | Wq | Wv] (resident across grid)
    # o_ref:    (Bblk, T, Hs)  f32
    bblk, t, c = x_ref.shape
    hs = head_size

    # Fused QKV projection: one MXU matmul, M = Bblk*T, N = 3*Hs, f32 accumulation.
    # Leading-dim merge reshape is layout-preserving (free).
    x2 = x_ref[...].reshape(bblk * t, c)
    qkv = jnp.dot(x2, wqkv_ref[...], preferred_element_type=jnp.float32)  # (Bblk*T, 3*Hs)

    # Static lane slices of the fused result; leading-dim split reshapes are free.
    k = qkv[:, 0 * hs:1 * hs].astype(jnp.bfloat16).reshape(bblk, t, hs)
    q = qkv[:, 1 * hs:2 * hs].astype(jnp.bfloat16).reshape(bblk, t, hs)
    v = qkv[:, 2 * hs:3 * hs].astype(jnp.bfloat16).reshape(bblk, t, hs)

    # Attention scores q @ k^T, batched over the Bblk sequences in this block.
    # Head dims are contracted directly (no transpose copy); scale = C**-0.5.
    s = jnp.einsum('bqd,bkd->bqk', q, k,
                   preferred_element_type=jnp.float32) * scale           # (Bblk, T, T)

    # Causal (tril) mask: built ONCE per grid step and broadcast over Bblk.
    row = lax.broadcasted_iota(jnp.int32, (t, t), 0)
    col = lax.broadcasted_iota(jnp.int32, (t, t), 1)
    s = jnp.where((col <= row)[None, :, :], s, -jnp.inf)

    # Numerically stable softmax in f32 (VPU); reciprocal on the EUP.
    m = jnp.max(s, axis=-1, keepdims=True)
    p = jnp.exp(s - m)
    denom = jnp.sum(p, axis=-1, keepdims=True)
    p = p * pl.reciprocal(denom, approx=True)

    # TODO(synk): train-mode stochastic dropout (pltpu.prng_seed/prng_random_bits
    #             + mask & 1/(1-p) rescale) not emitted; eval forward == identity.

    out = jnp.einsum('bqk,bkd->bqd', p.astype(jnp.bfloat16), v,
                     preferred_element_type=jnp.float32)                 # (Bblk, T, Hs)
    o_ref[...] = out.astype(o_ref.dtype)


def _pick_bblk(batch):
    """Largest divisor of `batch` that keeps the per-step block small (<= 8
    sequences, ~3 MiB live VMEM even at T = block_size = 128 -> safe on v5e's
    16 MiB scoped VMEM and v7x's 64 MiB) while leaving >= 2 grid steps whenever
    batch >= 2 so v7x's two TensorCores both get parallel work."""
    cap = max(1, min(8, batch if batch < 2 else batch // 2))
    for d in range(cap, 0, -1):
        if batch % d == 0:
            return d
    return 1


def head_forward(x, wk, wq, wv):
    """Single attention head forward pass.

    x:  (B, T, C) float (any float dtype; cast to bf16 for the MXU)
    w*: (C, head_size) float32, stored (in, out) so the kernel does x @ W.
    Returns (B, T, head_size) float32.
    """
    B, T, C = x.shape
    Hs = wk.shape[1]
    scale = 1.0 / math.sqrt(C)          # matches `C ** (-0.5)` in the spec

    # bf16 MXU operands.  In a real pipeline the upstream producer should emit
    # bf16 x inside the same jit so this cast fuses away; the weights' bf16 cast
    # also halves their DMA bytes.  f32 accumulation is preserved in-kernel.
    x_b = x.astype(jnp.bfloat16)
    wqkv = jnp.concatenate([wk, wq, wv], axis=1).astype(jnp.bfloat16)   # (C, 3*Hs)

    Bblk = _pick_bblk(B)
    grid = (B // Bblk,)

    kernel = functools.partial(_head_kernel, scale=scale, head_size=Hs)

    flops = B * (6 * T * C * Hs + 4 * T * T * Hs)           # QKV proj + 2 attn matmuls
    bytes_accessed = x_b.size * 2 + wqkv.size * 2 + B * T * Hs * 4
    cost = pl.CostEstimate(flops=flops,
                           transcendentals=B * T * T,        # exp in softmax
                           bytes_accessed=bytes_accessed)

    return pl.pallas_call(
        kernel,
        out_shape=jax.ShapeDtypeStruct((B, T, Hs), jnp.float32),
        grid_spec=pl.GridSpec(
            grid=grid,                                        # >= 2 steps when B >= 2
            in_specs=[
                pl.BlockSpec((Bblk, T, C), lambda b: (b, 0, 0)),     # x block
                pl.BlockSpec((C, 3 * Hs), lambda b: (0, 0)),         # fused Wqkv (resident)
            ],
            out_specs=pl.BlockSpec((Bblk, T, Hs), lambda b: (b, 0, 0)),
        ),
        compiler_params=pltpu.CompilerParams(
            dimension_semantics=("parallel",),
        ),
        cost_estimate=cost,
    )(x_b, wqkv)


def init_params(key, n_embd, head_size):
    """PyTorch nn.Linear(bias=False) default init:
    uniform(-1/sqrt(fan_in), 1/sqrt(fan_in)); stored (in, out) for x @ W."""
    kk, kq, kv = jax.random.split(key, 3)
    bound = 1.0 / math.sqrt(n_embd)
    wk = jax.random.uniform(kk, (n_embd, head_size), jnp.float32, -bound, bound)
    wq = jax.random.uniform(kq, (n_embd, head_size), jnp.float32, -bound, bound)
    wv = jax.random.uniform(kv, (n_embd, head_size), jnp.float32, -bound, bound)
    return wk, wq, wv


if __name__ == "__main__":
    n_embd = 192          # matches the module's n_embd constant
    head_size = 32        # e.g. n_embd // 6 heads
    B, T = 4, 16          # small batch / sequence (T <= block_size = 128)

    key = jax.random.PRNGKey(0)
    kx, kp = jax.random.split(key)

    x = jax.random.normal(kx, (B, T, n_embd), dtype=jnp.float32)
    wk, wq, wv = init_params(kp, n_embd, head_size)

    y = jax.block_until_ready(head_forward(x, wk, wq, wv))

    # Plain-JAX f32 reference (eval-mode dropout == identity).
    k = x @ wk
    q = x @ wq
    v = x @ wv
    wei = (q @ jnp.swapaxes(k, -1, -2)) * (n_embd ** -0.5)
    mask = jnp.tril(jnp.ones((T, T), dtype=bool))
    wei = jnp.where(mask[None, :, :], wei, -jnp.inf)
    wei = jax.nn.softmax(wei, axis=-1)
    ref = wei @ v

    assert y.shape == (B, T, head_size)
    # bf16 MXU inputs (f32 accumulation) -> loosened tolerance vs the f32 ref.
    assert jnp.allclose(y, ref, atol=5e-2, rtol=5e-2), float(jnp.max(jnp.abs(y - ref)))

    print("KERNEL_OK")
</pallas_src>

<mosaic_0001>
module attributes {stable_mosaic.version = 11 : i64} {
  func.func @_head_kernel(%arg0: i32, %arg1: memref<2x16x192xbf16, #tpu.memory_space<vmem>>, %arg2: memref<192x96xbf16, #tpu.memory_space<vmem>>, %arg3: memref<2x16x32xf32, #tpu.memory_space<vmem>>) attributes {dimension_semantics = [#tpu.dimension_semantics<parallel>], iteration_bounds = array<i64: 2>, scalar_prefetch = 0 : i64, scratch_operands = 0 : i64, tpu.core_type = #tpu.core_type<tc>, window_params = [{transform_indices = @transform_0, window_bounds = array<i64: 2, 16, 192>}, {pipeline_mode = #tpu.pipeline_mode<synchronous>, transform_indices = @transform_1, window_bounds = array<i64: 192, 96>}, {transform_indices = @transform_2, window_bounds = array<i64: 2, 16, 32>}]} {
    %c0 = arith.constant 0 : index
    %c0_0 = arith.constant 0 : index
    %c0_1 = arith.constant 0 : index
    %0 = vector.load %arg1[%c0, %c0_0, %c0_1] : memref<2x16x192xbf16, #tpu.memory_space<vmem>>, vector<2x16x192xbf16>
    %1 = vector.shape_cast %0 : vector<2x16x192xbf16> to vector<32x192xbf16>
    %c0_2 = arith.constant 0 : index
    %c0_3 = arith.constant 0 : index
    %2 = vector.load %arg2[%c0_2, %c0_3] : memref<192x96xbf16, #tpu.memory_space<vmem>>, vector<192x96xbf16>
    %cst = arith.constant dense<0.000000e+00> : vector<32x96xf32>
    %3 = tpu.matmul %1, %2, %cst {dimension_numbers = #tpu.dot_dimension_numbers<[1], [0], [0], [1], [0, 0, 1, 1], [], []>} : vector<32x192xbf16>, vector<192x96xbf16>, vector<32x96xf32> -> vector<32x96xf32>
    %4 = vector.extract_strided_slice %3 {offsets = [0, 0], sizes = [32, 32], strides = [1, 1]} : vector<32x96xf32> to vector<32x32xf32>
    %5 = arith.truncf %4 : vector<32x32xf32> to vector<32x32xbf16>
    %6 = vector.shape_cast %5 : vector<32x32xbf16> to vector<2x16x32xbf16>
    %7 = vector.extract_strided_slice %3 {offsets = [0, 32], sizes = [32, 32], strides = [1, 1]} : vector<32x96xf32> to vector<32x32xf32>
    %8 = arith.truncf %7 : vector<32x32xf32> to vector<32x32xbf16>
    %9 = vector.shape_cast %8 : vector<32x32xbf16> to vector<2x16x32xbf16>
    %10 = vector.extract_strided_slice %3 {offsets = [0, 64], sizes = [32, 32], strides = [1, 1]} : vector<32x96xf32> to vector<32x32xf32>
    %11 = arith.truncf %10 : vector<32x32xf32> to vector<32x32xbf16>
    %12 = vector.shape_cast %11 : vector<32x32xbf16> to vector<2x16x32xbf16>
    "tpu.trace_start"() <{level = 10 : i32, message = "bqd,bkd->bqk"}> : () -> ()
    %cst_4 = arith.constant dense<0.000000e+00> : vector<2x16x16xf32>
    %13 = tpu.matmul %9, %6, %cst_4 {dimension_numbers = #tpu.dot_dimension_numbers<[2], [2], [1], [1], [0, 0, 0, 1, 1, 1], [0], [0]>} : vector<2x16x32xbf16>, vector<2x16x32xbf16>, vector<2x16x16xf32> -> vector<2x16x16xf32>
    "tpu.trace_stop"() : () -> ()
    %cst_5 = arith.constant 0.0721687824 : f32
    %14 = vector.broadcast %cst_5 : f32 to vector<2x16x16xf32>
    %15 = arith.mulf %13, %14 : vector<2x16x16xf32>
    %16 = tpu.iota {dimensions = array<i32: 0>} : vector<16x16xi32>
    %17 = tpu.iota {dimensions = array<i32: 1>} : vector<16x16xi32>
    %18 = arith.cmpi sle, %17, %16 : vector<16x16xi32>
    %19 = vector.shape_cast %18 : vector<16x16xi1> to vector<1x16x16xi1>
    %cst_6 = arith.constant 0xFF800000 : f32
    %20 = vector.shape_cast %19 : vector<1x16x16xi1> to vector<1x16x16xi1>
    %21 = vector.broadcast %20 : vector<1x16x16xi1> to vector<2x16x16xi1>
    %22 = vector.broadcast %cst_6 : f32 to vector<2x16x16xf32>
    %23 = arith.select %21, %15, %22 : vector<2x16x16xi1>, vector<2x16x16xf32>
    %cst_7 = arith.constant dense<0xFF800000> : vector<2x16xf32>
    %24 = vector.multi_reduction <maximumf>, %23, %cst_7 [2] : vector<2x16x16xf32> to vector<2x16xf32>
    %25 = vector.shape_cast %24 : vector<2x16xf32> to vector<2x16x1xf32>
    %26 = vector.broadcast %25 : vector<2x16x1xf32> to vector<2x16x16xf32>
    %27 = arith.subf %23, %26 : vector<2x16x16xf32>
    %28 = math.exp %27 : vector<2x16x16xf32>
    %cst_8 = arith.constant dense<0.000000e+00> : vector<2x16xf32>
    %29 = vector.multi_reduction <add>, %28, %cst_8 [2] : vector<2x16x16xf32> to vector<2x16xf32>
    %30 = vector.shape_cast %29 : vector<2x16xf32> to vector<2x16x1xf32>
    %31 = tpu.reciprocal %30 {approx = true} : vector<2x16x1xf32> -> vector<2x16x1xf32>
    %32 = vector.broadcast %31 : vector<2x16x1xf32> to vector<2x16x16xf32>
    %33 = arith.mulf %28, %32 : vector<2x16x16xf32>
    %34 = arith.truncf %33 : vector<2x16x16xf32> to vector<2x16x16xbf16>
    "tpu.trace_start"() <{level = 10 : i32, message = "bqk,bkd->bqd"}> : () -> ()
    %cst_9 = arith.constant dense<0.000000e+00> : vector<2x16x32xf32>
    %35 = tpu.matmul %34, %12, %cst_9 {dimension_numbers = #tpu.dot_dimension_numbers<[2], [1], [1], [2], [0, 0, 0, 1, 1, 2], [0], [0]>} : vector<2x16x16xbf16>, vector<2x16x32xbf16>, vector<2x16x32xf32> -> vector<2x16x32xf32>
    "tpu.trace_stop"() : () -> ()
    %c0_10 = arith.constant 0 : index
    %c0_11 = arith.constant 0 : index
    %c0_12 = arith.constant 0 : index
    %36 = vector.load %arg3[%c0_10, %c0_11, %c0_12] : memref<2x16x32xf32, #tpu.memory_space<vmem>>, vector<2x16x32xf32>
    tpu.vector_store %arg3[%c0_10, %c0_11, %c0_12], %35 {strides = array<i32>} : memref<2x16x32xf32, #tpu.memory_space<vmem>>, vector<2x16x32xf32>,
    return
  }
  func.func @transform_0(%arg0: i32) -> (i32, i32, i32) {
    %c0_i32 = arith.constant 0 : i32
    %c0_i32_0 = arith.constant 0 : i32
    %c0_i32_1 = arith.constant 0 : i32
    return %arg0, %c0_i32, %c0_i32_0 : i32, i32, i32
  }
  func.func @transform_1(%arg0: i32) -> (i32, i32) {
    %c0_i32 = arith.constant 0 : i32
    %c0_i32_0 = arith.constant 0 : i32
    %c0_i32_1 = arith.constant 0 : i32
    return %c0_i32, %c0_i32_0 : i32, i32
  }
  func.func @transform_2(%arg0: i32) -> (i32, i32, i32) {
    %c0_i32 = arith.constant 0 : i32
    %c0_i32_0 = arith.constant 0 : i32
    %c0_i32_1 = arith.constant 0 : i32
    return %arg0, %c0_i32, %c0_i32_0 : i32, i32, i32
  }
}

</mosaic_0001>

<bundles_post_ra>
// kernel: tpu_custom_call.1
= control target key start
LH: loop header
LB: loop body
LE: loop exit
PB: predicated region body
PF: predicated region fallthrough
CT: control target
= control target key end

     0   :  { %7 = vsyncpa [#allocation3], 0  ;;  %s1309_s0 = inlined_call_operand.hbm [shape: bf16[4,16,192], index: 0, kind: input, shape index: {}]   ;;  %s1310_s1 = inlined_call_operand.hbm [shape: bf16[192,96], index: 1, kind: input, shape index: {}]   ;;  %s1311_s2 = inlined_call_operand.hbm [shape: f32[4,16,32], index: 2, kind: output, shape index: {}]  }
   0x1   :  { %9 = vsyncpa [#allocation3 + $0x1], 0 }
   0x2   :  { %10 = vsyncpa [#allocation6], 0 }
   0x3   :  { %11 = vsyncpa [#allocation4], 0 }
   0x4   :  { %13 = vsyncpa [#allocation4 + $0x1], 0  ;;  %s1057_s9 = smov 0   ;;  %s1059_s10 = smov 0  }
   0x5   :  { %s1061_s11 = smov 0   ;;  %s1063_s12 = smov 0  }
   0x6 LB: > { %s1078_s13 = sadd.s32 4294967295, %s1026_s12   ;;  %s720_s14 = sadd.s32 4294967294, %s1026_s12   ;;  %s1026_s12 = sphi %s1063_s12, %s1331_s12   ;;  %s1022_s11 = sphi %s1061_s11, %s1330_s11   ;;  %s1018_s10 = sphi %s1059_s10, %s1329_s10   ;;  %s1014_s9 = sphi %s1057_s9, %s1328_s9  }
   0x7   : > { %p39_p0 = scmp.ne.s32.totalorder %s1018_s10, %s1014_s9  ;;  %p1312_p1 = scmp.eq.s32.totalorder %s1078_s13, 0 }
   0x8   : > { %p90_p3 = scmp.eq.s32.totalorder %s720_s14, 1  ;;  %p721_p5 = scmp.ge.s32.totalorder %s1026_s12, 1 }
   0x9   : > { %p1087_p4 = por %p1312_p1, %p39_p0  ;;  %p97_p7 = scmp.lt.s32.totalorder %s1026_s12, 3 }
   0xa   : > { %p1092_p6 = por %p90_p3, %p39_p0  ;;  %s1028_s18 = smov [#allocation5]  }
   0xb   : > { %s1315_s15 = scalar_select %p1087_p4, 1, 0 }
   0xc   : > { %s1316_s16 = scalar_select %p1092_p6, 1, 0 }
   0xd   : > { %p1097_p8 = pnand %p721_p5, %p97_p7  ;;  %s109_s19 = sshll.u32 %s1028_s18, 4  ;;  %s1101_s19 = int_to_ptr.vmem [resolvable:$true] %s109_s19 }
   0xe   : > { %s1113_s21 = sadd.s32 1, %s1026_s12   ;;  %s26_s22 = sadd.s32 1, %s1022_s11 }
   0xf   : > { %s1317_s17 = scalar_select %p1097_p8, 1, 0 }
  0x10   : > { %p804_p9 = pneg %p1097_p8  ;;  %s23_s23 = ssub.s32 %s1026_s12, %s1113_s21 }
  0x11   : > { %s898_s26 = scalar_lea.hbm %s1310_s1, 1536 }
  0x12   : > { %p1108_p11 = pnand %p804_p9, %p1312_p1  ;;  %p899_p12 = scmp.ne.s32.totalorder %s1310_s1, %s898_s26 }
  0x13   : > { %p905_p5 = scmp.lt.u32.totalorder %s898_s26, %s1310_s1 }
  0x14   : > { %p900_p13 = pneg %p1108_p11 }
  0x16   : > { %p901_p0 = pnand %p900_p13, %p899_p12 }
  0x18   : > { %p902_p3 = pneg %p901_p0 }
  0x1a   : > { %p907_p7 = pnand %p905_p5, %p902_p3 }
  0x1c   : > { %910 = shalt.err (!%p907_p7)
}
  0x1d   : > { %s911_s3 = scalar_lea.vmem %s1101_s19, 1536  ;;  %p919_p2 = scmp.lt.s32.totalorder %s1101_s19, %s1101_s19 }
  0x1e   : > { %p912_p9 = scmp.ne.s32.totalorder %s1101_s19, %s911_s3  ;;  %p920_p6 = scmp.lt.s32.totalorder %s911_s3, %s911_s3 }
  0x20   : > { %p914_p10 = pnand %p912_p9, %p900_p13  ;;  %p921_p4 = por %p920_p6, %p919_p2 }
  0x22   : > { %p915_p1 = pneg %p914_p10 }
  0x24   : > { %p922_p8 = pnand %p921_p4, %p915_p1 }
  0x26   : > { %925 = shalt.err (!%p922_p8)
}
  0x27   : > { %s1029_s4 = smov 64   ;;  %s1030_s5 = smov 4  }
  0x28   : > { %807 = dma.hbm_to_vmem [thread:$0]  (!%p1108_p11), %s1310_s1, 1536, %s1101_s19, [#allocation6], %s1029_s4, %s1029_s4, %s1030_s5  }
  0x29   : > { %p24_p2 = scmp.eq.s32.totalorder %s23_s23, 0  ;;  %p33_p1 = scmp.ne.s32.totalorder %s1022_s11, %s1018_s10 }
  0x2a   : > { %p34_p4 = scmp.eq.s32.totalorder %s1026_s12, 0  ;;  %p817_p6 = scmp.lt.s32.totalorder %s1026_s12, 2 }
  0x2b   : > { %s1144_s8 = scalar_select %p24_p2, %s1022_s11, %s26_s22  }
  0x2c   : > { %p35_p8 = por %p34_p4, %p33_p1  ;;  %p1319_p10 = scmp.eq.s32.totalorder %s1078_s13, 1 }
  0x2d   : > { %s123_s18 = sand.u32 1, %s1022_s11   ;;  %s761_s24 = sshll.u32 %s1026_s12, 9 }
  0x2e   : > { %p1148_p12 = por %p1319_p10, %p33_p1  ;;  %s724_s25 = sshll.u32 %s123_s18, 5 }
  0x2f   : > { %s1157_s27 = scalar_lea.hbm %s1309_s0, %s761_s24  ;;  %s127_s19 = scalar_lea.vmem [#allocation2], %s724_s25 }
  0x30   : > { %s135_s22 = sshll.u32 %s127_s19, 4  ;;  %p1159_p11 = pnand %p817_p6, %p35_p8  ;;  %s1163_s22 = int_to_ptr.vmem [resolvable:$true] %s135_s22 }
  0x31   : > { %s1165_s28 = scalar_lea.sflag [#allocation3], %s123_s18  ;;  %s926_s29 = scalar_lea.hbm %s1157_s27, 512 }
  0x32   : > { %p927_p13 = scmp.ne.s32.totalorder %s1157_s27, %s926_s29  ;;  %p928_p0 = pneg %p1159_p11 }
  0x33   : > { %s931_s4 = scalar_lea.hbm %s1309_s0, 1024  ;;  %p932_p7 = scmp.lt.u32.totalorder %s1157_s27, %s1309_s0 }
  0x34   : > { %p929_p3 = pnand %p928_p0, %p927_p13  ;;  %p933_p9 = scmp.lt.u32.totalorder %s931_s4, %s926_s29 }
  0x35   : > { %p935_p1 = scmp.lt.u32.totalorder %s926_s29, %s1157_s27 }
  0x36   : > { %p930_p5 = pneg %p929_p3  ;;  %p934_p2 = por %p933_p9, %p932_p7 }
  0x38   : > { %p936_p4 = por %p935_p1, %p934_p2 }
  0x3a   : > { %p937_p6 = pnand %p936_p4, %p930_p5 }
  0x3c   : > { %940 = shalt.err (!%p937_p6)
}
  0x3d   : > { %s941_s7 = scalar_lea.vmem %s1163_s22, 512  ;;  %s1031_s18 = smov [#allocation2]  }
  0x3e   : > { %p942_p8 = scmp.ne.s32.totalorder %s1163_s22, %s941_s7  ;;  %s946_s24 = sshll.u32 %s1031_s18, 4  ;;  %s947_s24 = int_to_ptr.vmem [resolvable:$false] %s946_s24 }
  0x3f   : > { %s948_s25 = scalar_lea.vmem %s947_s24, 1024  ;;  %p949_p3 = scmp.lt.s32.totalorder %s1163_s22, %s947_s24 }
  0x40   : > { %p944_p10 = pnand %p942_p8, %p928_p0  ;;  %p950_p7 = scmp.lt.s32.totalorder %s948_s25, %s941_s7 }
  0x42   : > { %p945_p13 = pneg %p944_p10  ;;  %p951_p9 = por %p950_p7, %p949_p3 }
  0x44   : > { %p952_p2 = pnand %p951_p9, %p945_p13 }
  0x46   : > { %955 = shalt.err (!%p952_p2)
}
  0x47   : > { %s1032_s20 = smov 128   ;;  %s1033_s26 = smov 8  }
  0x48   : > { %811 = dma.hbm_to_vmem [thread:$0]  (!%p1159_p11), %s1157_s27, 512, %s1163_s22, %s1165_s28, %s1032_s20, %s1032_s20, %s1033_s26  }
  0x49   : > { %p1322_p0 = scmp.ne.s32.totalorder %s1317_s17, 0 }
  0x4a   : > { %s1196_s19 = sand.u32 (!%p1322_p0), 1, %s1018_s10   ;;  %p1323_p5 = scmp.ne.s32.totalorder (!%p1322_p0), %s1315_s15, 0 }
  0x4b   : > { %147 = sbr.rel (%p1322_p0) target bundleno = 1238 (0x4d6), region = 28  ;;  %s729_s29 = sshll.u32 (!%p1322_p0), %s1196_s19, 5 }
  0x4c   : > { %s150_s30 = scalar_lea.sflag (!%p1322_p0), [#allocation3], %s1196_s19  ;;  %s1202_s3 = scalar_lea.vmem (!%p1322_p0), [#allocation2], %s729_s29 }
  0x52   : > { %1001 = dma.done.wait (%p1323_p5), %s150_s30, 512  }
  0x53   : > { %1003 = vsyncadd (%p1323_p5), %s150_s30, 4294966784  ;;  %p1324_p11 = scmp.eq.s32.totalorder %s1078_s13, 0 }
  0x55   : > { %1005 = dma.done.wait (%p1324_p11), [#allocation6], 1536   ;;  %p1325_p1 = pmov %p1324_p11 }
  0x56   : > { %v1034_v0 = vmov 0   ;;  %v864_v1 = vld [vmem:[#allocation5] sm:$0xff]   ;;  %v865_v2 = vld [vmem:[#allocation5 + $0x8] sm:$0xff]   ;;  %v866_v3 = vld [vmem:[#allocation5 + $0x10] sm:$0xff]   ;;  %vm299_vm0 = vcmask 523264   ;;  %v1035_v17 = vmov 0.0   ;;  %v462_v32 = vlaneseq }
  0x57   : > { %1007 = vsyncadd (%p1325_p1), [#allocation6], 4294965760  ;;  %306 = vmatprep.subr.bf16.mxu0 %v1034_v0  ;;  %v867_v4 = vld [vmem:[#allocation5 + $0x18] sm:$0xff]   ;;  %v878_v5 = vld [vmem:[%s1202_s3 + $0x4] ss:$8 sps:$4 sm:$0xff]   ;;  %772 = vmatprep.subr.bf16.mxu1 %v1035_v17  ;;  %vm1036_vm1 = vmmov 0  }
  0x58   : > { %307 = vmatpush1.bf16.msra.mxu0 %v864_v1  ;;  %v868_v6 = vld [vmem:[#allocation5 + $0x20] sm:$0xff]   ;;  %748 = vmatprep.mubr.msk.bf16.mxu0 %vm299_vm0, %v878_v5  ;;  %v869_v7 = vld [vmem:[#allocation5 + $0x28] sm:$0xff]   ;;  %v870_v8 = vld [vmem:[#allocation5 + $0x30] sm:$0xff]   ;;  %vm360_vm2 = vcmask 261120   ;;  %s1037_s15 = smov 96   ;;  %v463_v33 = vshrl.u32 %v462_v32, 7 }
  0x59   : > { %308 = vmatprep.subr.bf16.mxu0 %v1034_v0  ;;  %v871_v9 = vld [vmem:[#allocation5 + $0x38] sm:$0xff]   ;;  %v872_v10 = vld [vmem:[#allocation5 + $0x40] sm:$0xff]   ;;  %v873_v11 = vld [vmem:[#allocation5 + $0x48] sm:$0xff]   ;;  %774 = vmatprep.mubr.msk.bf16.mxu1 %vm1036_vm1, %v1035_v17  ;;  %v466_v34 = vand.u32 127, %v462_v32  ;;  %vm477_vm4 = vcmask 130048   ;;  %s1038_s17 = smov 64  }
  0x5a   : > { %v874_v12 = vld [vmem:[#allocation5 + $0x50] sm:$0xff]   ;;  %v875_v13 = vld [vmem:[#allocation5 + $0x58] sm:$0xff]   ;;  %v876_v14 = vld [vmem:[%s1202_s3] ss:$8 sps:$4 sm:$0xff]   ;;  %v464_v35 = vadd.s32 8, %v463_v33  ;;  %s177_s27 = scalar_lea.vmem [#allocation7], %s729_s29 }
  0x5b   : > { %v879_v15 = vld [vmem:[%s1202_s3 + $0x14] ss:$8 sps:$4 sm:$0xff]   ;;  %v881_v16 = vld [vmem:[%s1202_s3 + $0x10] ss:$8 sps:$4 sm:$0xff]   ;;  %vm467_vm3 = vcmp.le.s32.totalorder %v466_v34, %v463_v33  ;;  %s637_s22 = sshll.u32 %s177_s27, 4  ;;  %s763_s23 = sshll.u32 %s1078_s13, 9  ;;  %s1258_s22 = int_to_ptr.vmem [resolvable:$true] %s637_s22 }
  0x5c   : > { %309 = vmatpush1.bf16.msra.mxu0 %v865_v2  ;;  %vm468_vm5 = vcmp.le.s32.totalorder %v466_v34, %v464_v35  ;;  %s1263_s5 = scalar_lea.hbm %s1311_s2, %s763_s23  ;;  %s623_s6 = scalar_lea.sflag [#allocation4], %s1196_s19 }
  0x5d   : > { %310 = vmatprep.subr.bf16.mxu0 %v1034_v0  ;;  %s956_s13 = scalar_lea.vmem %s1258_s22, 512  ;;  %s1039_s7 = smov [#allocation7]  }
  0x5e   : > { %p957_p4 = scmp.ne.s32.totalorder %s1258_s22, %s956_s13  ;;  %s960_s18 = sshll.u32 %s1039_s7, 4  ;;  %s961_s18 = int_to_ptr.vmem [resolvable:$false] %s960_s18 }
  0x5f   : > { %s962_s24 = scalar_lea.vmem %s961_s18, 1024  ;;  %p963_p10 = scmp.lt.s32.totalorder %s1258_s22, %s961_s18 }
  0x60   : > { %311 = vmatpush1.bf16.msra.mxu0 %v866_v3  ;;  %p958_p6 = pnand %p957_p4, %p1148_p12  ;;  %p964_p13 = scmp.lt.s32.totalorder %s962_s24, %s956_s13 }
  0x61   : > { %312 = vmatprep.subr.bf16.mxu0 %v1034_v0 }
  0x62   : > { %p959_p8 = pneg %p958_p6  ;;  %p965_p3 = por %p964_p13, %p963_p10 }
  0x64   : > { %313 = vmatpush1.bf16.msra.mxu0 %v867_v4  ;;  %p966_p7 = pnand %p965_p3, %p959_p8 }
  0x65   : > { %314 = vmatprep.subr.bf16.mxu0 %v1034_v0 }
  0x68   : > { %315 = vmatpush1.bf16.msra.mxu0 %v868_v6 }
  0x69   : > { %316 = vmatprep.subr.bf16.mxu0 %v1034_v0 }
  0x6c   : > { %317 = vmatpush1.bf16.msra.mxu0 %v869_v7 }
  0x6d   : > { %318 = vmatprep.subr.bf16.mxu0 %v1034_v0 }
  0x70   : > { %319 = vmatpush1.bf16.msra.mxu0 %v870_v8 }
  0x71   : > { %320 = vmatprep.subr.bf16.mxu0 %v1034_v0 }
  0x74   : > { %321 = vmatpush1.bf16.msra.mxu0 %v871_v9 }
  0x75   : > { %322 = vmatprep.subr.bf16.mxu0 %v1034_v0 }
  0x78   : > { %323 = vmatpush1.bf16.msra.mxu0 %v872_v10 }
  0x79   : > { %324 = vmatprep.subr.bf16.mxu0 %v1034_v0 }
  0x7c   : > { %325 = vmatpush1.bf16.msra.mxu0 %v873_v11 }
  0x7d   : > { %326 = vmatprep.subr.bf16.mxu0 %v1034_v0 }
  0x80   : > { %327 = vmatpush1.bf16.msra.mxu0 %v874_v12 }
  0x81   : > { %328 = vmatprep.subr.bf16.mxu0 %v1034_v0 }
  0x84   : > { %329 = vmatpush1.bf16.msra.mxu0 %v875_v13 }
  0x87   : > { %339 = vmatmul.mubr.bf16.vlgmr.msra.gmra.mrb[0].mxu0 %v876_v14 }
  0x88   : > { %749 = vmatprep.mubr.msk.bf16.mxu0 %vm299_vm0, %v879_v15 }
  0x8f   : > { %347 = vmatmul.mubr.bf16.gmra.mrb[4].mxu0 %v881_v16 }
 0x15a   : > { %v340_v18 = vpop.f32.mrb[0].mxu0 }
 0x15b   : > { %v342_v19 = vpop.f32.mrb[1].mxu0 }
 0x15c   : > { %v343_v20 = vpop.f32.mrb[2].mxu0 }
 0x15d   : > { %v1221_v21 = vpack.c.bf16 %v343_v20, %v340_v18  ;;  %v345_v22 = vpop.f32.mrb[3].mxu0 }
 0x15f   : > { %358 = vrot.lane.b32.xlu0 %v1221_v21, %s1037_s15  ;;  %v365_v23 = vsel %vm360_vm2, %v1221_v21, 0 }
 0x160   : > { %773 = vmatpush3.bf16.xpose.msra.mxu1 %v365_v23 }
 0x161   : > { %778 = vmatprep.subr.bf16.mxu1 %v1035_v17 }
 0x162   : > { %v348_v24 = vpop.f32.mrb[4].mxu0 }
 0x163   : > { %v350_v25 = vpop.f32.mrb[5].mxu0 }
 0x164   : > { %v351_v26 = vpop.f32.mrb[6].mxu0 }
 0x165   : > { %v356_v27 = vpack.c.bf16 %v351_v26, %v348_v24  ;;  %v353_v28 = vpop.f32.mrb[7].mxu0 }
 0x167   : > { %409 = vrot.lane.b32.xlu0 %v356_v27, %s1037_s15  ;;  %v415_v30 = vsel %vm360_vm2, %v356_v27, 0 }
 0x1d1   : > { %v359_v29 = vpop.permute.xlu0 %358 }
 0x1d2   : > { %775 = vmatmul.mubr.msk.bf16.vlgmr.msra.gmra.mrb[0].mxu1 %vm360_vm2, %v359_v29 }
 0x1d3   : > { %779 = vmatpush3.bf16.xpose.msra.mxu1 %v415_v30  ;;  %780 = vmatprep.mubr.msk.bf16.mxu1 %vm1036_vm1, %v1035_v17 }
 0x1d4   : > { %784 = vmatprep.subr.bf16.mxu1 %v1035_v17 }
 0x1d9   : > { %v410_v31 = vpop.permute.xlu0 %409 }
 0x1da   : > { %781 = vmatmul.mubr.msk.bf16.vlgmr.msra.gmra.mrb[4].mxu1 %vm360_vm2, %v410_v31 }
 0x1db   : > { %786 = vmatprep.mubr.msk.bf16.mxu1 %vm1036_vm1, %v1035_v17 }
 0x2a5   : > { %v401_v36 = vpop.f32.mrb[0].mxu1 }
 0x2a6   : > { %v458_v37 = vmul.f32 0.07216878, %v401_v36  ;;  %v776_v38 = vpop.f32.mrb[1].mxu1 }
 0x2a7   : > { %v404_v39 = vpop.f32.mrb[2].mxu1 }
 0x2a8   : > { %v459_v40 = vmul.f32 0.07216878, %v404_v39  ;;  %v777_v41 = vpop.f32.mrb[3].mxu1  ;;  %v473_v42 = vsel %vm467_vm3, %v458_v37, -inf }
 0x2a9   : > { %v478_v43 = vsel %vm477_vm4, %v473_v42, -inf }
 0x2aa   : > { %479 = vmax.xlane.f32.xlu1 %v478_v43  ;;  %v474_v44 = vsel %vm468_vm5, %v459_v40, -inf }
 0x2ab   : > { %v481_v46 = vsel %vm477_vm4, %v474_v44, -inf }
 0x2ad   : > { %v451_v45 = vpop.f32.mrb[4].mxu1 }
 0x2ae   : > { %v460_v47 = vmul.f32 0.07216878, %v451_v45  ;;  %482 = vmax.xlane.f32.xlu1 %v481_v46  ;;  %v782_v48 = vpop.f32.mrb[5].mxu1 }
 0x2af   : > { %v454_v49 = vpop.f32.mrb[6].mxu1 }
 0x2b0   : > { %v461_v50 = vmul.f32 0.07216878, %v454_v49  ;;  %v783_v51 = vpop.f32.mrb[7].mxu1  ;;  %v475_v52 = vsel %vm467_vm3, %v460_v47, -inf }
 0x2b1   : > { %v484_v53 = vsel %vm477_vm4, %v475_v52, -inf }
 0x2b2   : > { %485 = vmax.xlane.f32.xlu0 %v484_v53  ;;  %v476_v54 = vsel %vm468_vm5, %v461_v50, -inf }
 0x2b3   : > { %v487_v55 = vsel %vm477_vm4, %v476_v54, -inf }
 0x2b4   : > { %488 = vmax.xlane.f32.xlu1 %v487_v55 }
 0x2c8   : > { %571 = vrot.lane.b32.xlu0 %v356_v27, %s1038_s17 }
 0x337   : > { %v480_v56 = vpop.xlane.xlu1 %479 }
 0x338   : > { %v490_v57 = vsub.f32 %v473_v42, %v480_v56 }
 0x33a   : > { %v494_v58 = vmul.f32 1.442695, %v490_v57 }
 0x33b   : > { %v483_v59 = vpop.xlane.xlu1 %482 }
 0x33c   : > { %882 = vpow2.f32 %v494_v58  ;;  %v491_v60 = vsub.f32 %v474_v44, %v483_v59 }
 0x33e   : > { %v496_v61 = vmul.f32 1.442695, %v491_v60 }
 0x33f   : > { %v486_v62 = vpop.xlane.xlu0 %485 }
 0x340   : > { %884 = vpow2.f32 %v496_v61  ;;  %v492_v63 = vsub.f32 %v475_v52, %v486_v62 }
 0x341   : > { %v489_v0 = vpop.xlane.xlu1 %488 }
 0x342   : > { %v498_v1 = vmul.f32 1.442695, %v492_v63  ;;  %v493_v2 = vsub.f32 %v476_v54, %v489_v0 }
 0x343   : > { %v572_v24 = vpop.permute.xlu0 %571 }
 0x344   : > { %886 = vpow2.f32 %v498_v1  ;;  %v500_v3 = vmul.f32 1.442695, %v493_v2 }
 0x346   : > { %v883_v4 = vpop.eup %882  ;;  %888 = vpow2.f32 %v500_v3 }
 0x347   : > { %v502_v5 = vsel %vm477_vm4, %v883_v4, 0.0 }
 0x348   : > { %503 = vadd.xlane.f32.xlu1 %v502_v5 }
 0x34a   : > { %v885_v6 = vpop.eup %884 }
 0x34b   : > { %v505_v7 = vsel %vm477_vm4, %v885_v6, 0.0 }
 0x34c   : > { %506 = vadd.xlane.f32.xlu1 %v505_v7 }
 0x34e   : > { %v887_v8 = vpop.eup %886 }
 0x34f   : > { %v508_v9 = vsel %vm477_vm4, %v887_v8, 0.0 }
 0x350   : > { %v889_v10 = vpop.eup %888  ;;  %509 = vadd.xlane.f32.xlu1 %v508_v9 }
 0x351   : > { %v511_v11 = vsel %vm477_vm4, %v889_v10, 0.0 }
 0x354   : > { %512 = vadd.xlane.f32.xlu1 %v511_v11 }
 0x365   : > { %524 = vrot.lane.b32.xlu1 %v1221_v21, %s1038_s17 }
 0x3d5   : > { %v504_v12 = vpop.xlane.xlu1 %503 }
 0x3d6   : > { %890 = vrcp.f32 %v504_v12 }
 0x3d9   : > { %v507_v13 = vpop.xlane.xlu1 %506 }
 0x3da   : > { %892 = vrcp.f32 %v507_v13 }
 0x3dd   : > { %v510_v14 = vpop.xlane.xlu1 %509 }
 0x3de   : > { %894 = vrcp.f32 %v510_v14 }
 0x3e0   : > { %v891_v16 = vpop.eup %890 }
 0x3e1   : > { %v513_v15 = vpop.xlane.xlu1 %512  ;;  %v518_v19 = vmul.f32 %v891_v16, %v883_v4 }
 0x3e2   : > { %896 = vrcp.f32 %v513_v15 }
 0x3e4   : > { %v893_v18 = vpop.eup %892 }
 0x3e5   : > { %v519_v20 = vmul.f32 %v893_v18, %v885_v6  ;;  %v525_v22 = vpop.permute.xlu1 %524 }
 0x3e6   : > { %785 = vmatpush3.bf16.msra.mxu1 %v525_v22 }
 0x3e7   : > { %v522_v23 = vpack.c.bf16 %v519_v20, %v518_v19  ;;  %790 = vmatprep.subr.bf16.mxu1 %v1035_v17 }
 0x3e8   : > { %v895_v21 = vpop.eup %894 }
 0x3e9   : > { %787 = vmatmul.mubr.msk.bf16.vlgmr.msra.gmra.mrb[8].mxu1 %vm477_vm4, %v522_v23  ;;  %v520_v26 = vmul.f32 %v895_v21, %v887_v8 }
 0x3ea   : > { %791 = vmatpush3.bf16.msra.mxu1 %v572_v24  ;;  %792 = vmatprep.mubr.msk.bf16.mxu1 %vm1036_vm1, %v1035_v17 }
 0x3ec   : > { %v897_v25 = vpop.eup %896 }
 0x3ed   : > { %v521_v27 = vmul.f32 %v897_v25, %v889_v10 }
 0x3ef   : > { %v523_v28 = vpack.c.bf16 %v521_v27, %v520_v26 }
 0x3f1   : > { %793 = vmatmul.mubr.msk.bf16.vlgmr.msra.gmra.mrb[12].mxu1 %vm477_vm4, %v523_v28 }
 0x4bc   : > { %v564_v29 = vpop.f32.mrb[8].mxu1 }
 0x4bd   : > { %618 = vst.msk [vmem:[%s177_s27] sm:$0xff] %vm360_vm2, %v564_v29  ;;  %v788_v30 = vpop.f32.mrb[9].mxu1 }
 0x4be   : > { %v567_v31 = vpop.f32.mrb[10].mxu1 }
 0x4bf   : > { %619 = vst.msk [vmem:[%s177_s27 + $0x8] sm:$0xff] %vm360_vm2, %v567_v31  ;;  %v789_v32 = vpop.f32.mrb[11].mxu1 }
 0x4c4   : > { %v611_v17 = vpop.f32.mrb[12].mxu1 }
 0x4c5   : > { %620 = vst.msk [vmem:[%s177_s27 + $0x10] sm:$0xff] %vm360_vm2, %v611_v17  ;;  %v794_v33 = vpop.f32.mrb[13].mxu1 }
 0x4c6   : > { %v614_v34 = vpop.f32.mrb[14].mxu1 }
 0x4c7   : > { %621 = vst.msk [vmem:[%s177_s27 + $0x18] sm:$0xff] %vm360_vm2, %v614_v34  ;;  %v795_v35 = vpop.f32.mrb[15].mxu1 }
 0x4c8   : > { %969 = shalt.err (!%p966_p7)
}
 0x4c9   : > { %s970_s25 = scalar_lea.hbm %s1263_s5, 512  ;;  %s974_s29 = scalar_lea.hbm %s1311_s2, 1024 }
 0x4ca   : > { %p971_p9 = scmp.ne.s32.totalorder %s1263_s5, %s970_s25  ;;  %p975_p5 = scmp.lt.u32.totalorder %s1263_s5, %s1311_s2 }
 0x4cb   : > { %p976_p11 = scmp.lt.u32.totalorder %s974_s29, %s970_s25  ;;  %p978_p4 = scmp.lt.u32.totalorder %s970_s25, %s1263_s5 }
 0x4cc   : > { %p972_p2 = pnand %p971_p9, %p1148_p12 }
 0x4cd   : > { %p977_p1 = por %p976_p11, %p975_p5 }
 0x4ce   : > { %p973_p0 = pneg %p972_p2 }
 0x4cf   : > { %p979_p6 = por %p978_p4, %p977_p1 }
 0x4d1   : > { %p980_p8 = pnand %p979_p6, %p973_p0 }
 0x4d3   : > { %983 = shalt.err (!%p980_p8)
}
 0x4d4   : > { %s1040_s15 = smov 128   ;;  %s1041_s17 = smov 8  }
 0x4d5   : > { %802 = dma.vmem_to_hbm [thread:$0]  (%p1148_p12), %s1258_s22, 512, %s1263_s5, %s623_s6, %s1040_s15, %s1040_s15, %s1041_s17  }
 0x4d6 PF: > { %s652_s27 = sand.u32 1, %s1014_s9   ;;  %p1326_p10 = scmp.ne.s32.totalorder %s1316_s16, 0 }
 0x4d7   : > { %p1327_p13 = scmp.ge.s32.totalorder %s1026_s12, 2  ;;  %s653_s23 = scalar_lea.sflag [#allocation4], %s652_s27 }
 0x4d9   : > { %p813_p3 = pnand %p1327_p13, %p1326_p10 }
 0x4db   : > { %1009 = dma.done.wait (!%p813_p3), %s653_s23, 512  }
 0x4dc   : > { %1011 = vsyncadd (!%p813_p3), %s653_s23, 4294966784  ;;  %p16_p7 = scmp.ge.s32.totalorder %s1113_s21, 4   ;;  %s1328_s9 = smov %s1018_s10 }
 0x4dd   : > { %s1329_s10 = smov %s1022_s11  ;;  %s1330_s11 = smov %s1144_s8 }
 0x4de   : > { %s1331_s12 = smov %s1113_s21  ;;  %18 = sbr.rel (!%p16_p7) target bundleno = 6 (0x6), region = 77 }
 0x4e5   :  { %658 = vsyncpa [#allocation3], 1 }
 0x4e6   :  { %660 = vsyncpa [#allocation3 + $0x1], 1 }
 0x4e7   :  { %661 = vsyncpa [#allocation6], 1 }
 0x4e8   :  { %662 = vsyncpa [#allocation4], 1 }
 0x4e9   :  { %664 = vsyncpa [#allocation4 + $0x1], 1 }

</bundles_post_ra>
